<compile_context>
chip_gen: v5e
topology: v5e:2x2
jax: 0.10.0
libtpu: 0.0.40
codegen_flags: <defaults>
</compile_context>

<pallas_src>
import math

import jax
import jax.numpy as jnp
from jax.experimental import pallas as pl
from jax.experimental.pallas import tpu as pltpu


def _dropout_encoder_kernel(x_ref, drop_ref, o_ref):
    # drop_ref is (1, tf) in x's dtype: nonzero where the feature column is
    # dropped. Broadcasts over the batch-tile rows; stays in the input dtype.
    x = x_ref[...]
    zero = jnp.zeros((), dtype=x.dtype)
    o_ref[...] = jnp.where(drop_ref[...] != zero, zero, x)


def _tpu_generation():
    try:
        kind = jax.devices()[0].device_kind.lower()
    except Exception:
        return None
    if "v5 lite" in kind or "v5e" in kind or "v5lite" in kind:
        return "v5e"
    if "v6" in kind:
        return "v6e"
    if "v7" in kind:
        return "v7x"
    return None


def _gen_tile_policy(gen):
    """Returns (per-tile byte cap, vmem_limit_bytes).

    Double-buffered input + output => ~4x the cap of live VMEM plus the mask.
      v5e: 128 MiB physical, 16 MiB scoped default -> modest tiles, raise limit.
      v6e: 128 MiB physical, 32 MiB default        -> big tiles, 64 MiB limit.
      v7x:  64 MiB physical, 32 MiB default        -> medium tiles, 48 MiB limit.
    """
    if gen == "v5e":
        return 3 * 1024 * 1024, 32 << 20
    if gen == "v6e":
        return 8 * 1024 * 1024, 64 << 20
    if gen == "v7x":
        return 5 * 1024 * 1024, 48 << 20
    return 4 * 1024 * 1024, 32 << 20   # unknown generation: conservative


def _choose_tiles(batch, feat, itemsize, cap_bytes):
    """Pick (batch_tile, feat_tile): the largest tiles keeping one (tb, tf)
    slab under cap_bytes, respecting the (sublane, 128) layout constraint."""
    sublane = {1: 32, 2: 16}.get(itemsize, 8)
    lane = 128
    # Feature tile: keep the full row if a minimum-height slab fits, otherwise
    # a multiple of 128 that does (Pallas pads a partial trailing block, which
    # is safe for a pure elementwise write).
    tf = feat
    if feat > lane and sublane * feat * itemsize > cap_bytes:
        tf = (cap_bytes // (sublane * itemsize)) // lane * lane
        tf = max(lane, min(tf, feat))
    # Batch tile: as many rows of the chosen width as fit under the cap.
    row_bytes = max(1, tf * itemsize)
    tb = (cap_bytes // row_bytes) // sublane * sublane
    tb = max(sublane, tb)
    if tb >= batch:
        tb = batch
    return tb, tf


def dropout_encoder(x, p, key, training=True, *, batch_tile=None, feat_tile=None,
                    small_bypass_bytes=1 << 20, donate_x=False):
    """Pallas implementation of DropoutEncoder.forward.

    x:    (batch, features) array.
    p:    probability of zeroing each feature COLUMN (no rescale).
    key:  jax PRNG key (replaces torch's global RNG state); vary per step.
    """
    if not training:
        return x

    batch, feat = x.shape
    itemsize = jnp.dtype(x.dtype).itemsize

    # Per-feature-column Bernoulli draw, matching `uniform_(0,1) <= p` exactly.
    u = jax.random.uniform(key, (feat,), dtype=jnp.float32)
    drop = (u <= jnp.float32(p)).astype(x.dtype).reshape(1, feat)

    # Tiny inputs: pallas_call is a fusion barrier with fixed launch cost; let
    # XLA fuse the select into its neighbours instead.
    if batch * feat * itemsize <= small_bypass_bytes:
        zero = jnp.zeros((), x.dtype)
        return jnp.where(drop != zero, zero, x)

    # Lane-dense repack: if F is not a multiple of 128, fold k batch rows into
    # one so the last dim becomes a multiple of 128 (unmasked full-width `vst`
    # stores). The column mask simply repeats k times.
    orig_shape = x.shape
    if feat % 128 != 0:
        k = 128 // math.gcd(feat, 128)
        if k > 1 and batch % k == 0:
            x = x.reshape(batch // k, k * feat)
            drop = jnp.tile(drop, (1, k))
            batch, feat = x.shape

    gen = _tpu_generation()
    cap_bytes, vmem_limit = _gen_tile_policy(gen)
    tb, tf = _choose_tiles(batch, feat, itemsize, cap_bytes)
    if batch_tile is not None:
        tb = int(min(batch_tile, batch))
    if feat_tile is not None:
        tf = int(min(feat_tile, feat))

    grid = (pl.cdiv(batch, tb), pl.cdiv(feat, tf))

    # Both grid axes are independent. On v7x, CORE_PARALLEL on the batch axis
    # actually splits the grid across the two TensorCores; elsewhere PARALLEL.
    batch_sem = pltpu.PARALLEL
    if gen == "v7x" and grid[0] >= 2 and grid[0] % 2 == 0:
        batch_sem = pltpu.CORE_PARALLEL

    cost = pl.CostEstimate(
        flops=0,
        transcendentals=0,
        bytes_accessed=2 * batch * feat * itemsize + feat * itemsize)

    call_kwargs = {}
    if donate_x:
        # Reuse x's HBM buffer for the output (caller must not reuse x).
        call_kwargs["input_output_aliases"] = {0: 0}

    def _call(dim_sems):
        return pl.pallas_call(
            _dropout_encoder_kernel,
            out_shape=jax.ShapeDtypeStruct(x.shape, x.dtype),
            grid=grid,
            in_specs=[
                pl.BlockSpec((tb, tf), lambda i, j: (i, j)),   # x: (batch, feat) tiles
                pl.BlockSpec((1, tf), lambda i, j: (0, j)),    # mask: batch-resident
            ],
            out_specs=pl.BlockSpec((tb, tf), lambda i, j: (i, j)),
            compiler_params=pltpu.CompilerParams(
                dimension_semantics=dim_sems,
                vmem_limit_bytes=vmem_limit,
            ),
            cost_estimate=cost,
            **call_kwargs,
        )(x, drop)

    try:
        out = _call((batch_sem, pltpu.PARALLEL))
    except Exception:
        if batch_sem is not pltpu.PARALLEL:
            out = _call((pltpu.PARALLEL, pltpu.PARALLEL))   # safe fallback
        else:
            raise

    if out.shape != orig_shape:
        out = out.reshape(orig_shape)
    return out


if __name__ == "__main__":
    key = jax.random.PRNGKey(0)
    kx1, kx2, km1, km2 = jax.random.split(key, 4)

    p = 0.5

    # Case 1: F not a multiple of 128 -> exercises the lane-dense repack
    # ((64, 96) -> (16, 384)) and a 2-step batch grid via the explicit tile.
    B1, F1 = 64, 96
    x1 = jax.random.normal(kx1, (B1, F1), dtype=jnp.float32)
    out1 = dropout_encoder(x1, p=p, key=km1, training=True,
                           batch_tile=8, small_bypass_bytes=0)
    out1 = jax.block_until_ready(out1)
    assert out1.shape == x1.shape
    drop1 = jax.random.uniform(km1, (F1,), dtype=jnp.float32) <= jnp.float32(p)
    ref1 = jnp.where(drop1[None, :], 0.0, x1)
    assert bool(jnp.all(out1 == ref1)), "case 1: kernel must match reference masked_fill"
    col_zero = jnp.all(out1 == 0.0, axis=0)
    col_same = jnp.all(out1 == x1, axis=0)
    assert bool(jnp.all(col_zero | col_same)), "columns must be fully zeroed or untouched"
    assert bool(jnp.any(col_zero)) and bool(jnp.any(col_same))

    # Case 2: F a multiple of 128 -> plain tiled path with a 4-step batch grid.
    B2, F2 = 64, 128
    x2 = jax.random.normal(kx2, (B2, F2), dtype=jnp.float32)
    out2 = dropout_encoder(x2, p=p, key=km2, training=True,
                           batch_tile=16, small_bypass_bytes=0)
    out2 = jax.block_until_ready(out2)
    drop2 = jax.random.uniform(km2, (F2,), dtype=jnp.float32) <= jnp.float32(p)
    ref2 = jnp.where(drop2[None, :], 0.0, x2)
    assert bool(jnp.all(out2 == ref2)), "case 2: kernel must match reference masked_fill"

    # Eval mode is the identity.
    out_eval = dropout_encoder(x1, p=p, key=km1, training=False)
    assert bool(jnp.all(out_eval == x1))

    print("KERNEL_OK")
</pallas_src>

<mosaic_0001>
module attributes {stable_mosaic.version = 11 : i64} {
  func.func @_dropout_encoder_kernel(%arg0: i32, %arg1: i32, %arg2: memref<8x384xf32, #tpu.memory_space<vmem>>, %arg3: memref<1x384xf32, #tpu.memory_space<vmem>>, %arg4: memref<8x384xf32, #tpu.memory_space<vmem>>) attributes {dimension_semantics = [#tpu.dimension_semantics<parallel>, #tpu.dimension_semantics<parallel>], iteration_bounds = array<i64: 2, 1>, scalar_prefetch = 0 : i64, scratch_operands = 0 : i64, tpu.core_type = #tpu.core_type<tc>, window_params = [{transform_indices = @transform_0, window_bounds = array<i64: 8, 384>}, {transform_indices = @transform_1, window_bounds = array<i64: 1, 384>}, {transform_indices = @transform_2, window_bounds = array<i64: 8, 384>}]} {
    %c0 = arith.constant 0 : index
    %c0_0 = arith.constant 0 : index
    %0 = vector.load %arg2[%c0, %c0_0] : memref<8x384xf32, #tpu.memory_space<vmem>>, vector<8x384xf32>
    %c0_1 = arith.constant 0 : index
    %c0_2 = arith.constant 0 : index
    %1 = vector.load %arg3[%c0_1, %c0_2] : memref<1x384xf32, #tpu.memory_space<vmem>>, vector<1x384xf32>
    %cst = arith.constant 0.000000e+00 : f32
    %2 = vector.broadcast %cst : f32 to vector<1x384xf32>
    %3 = arith.cmpf one, %1, %2 : vector<1x384xf32>
    %cst_3 = arith.constant 0.000000e+00 : f32
    %4 = vector.shape_cast %3 : vector<1x384xi1> to vector<1x384xi1>
    %5 = vector.broadcast %4 : vector<1x384xi1> to vector<8x384xi1>
    %6 = vector.broadcast %cst_3 : f32 to vector<8x384xf32>
    %7 = arith.select %5, %6, %0 : vector<8x384xi1>, vector<8x384xf32>
    %c0_4 = arith.constant 0 : index
    %c0_5 = arith.constant 0 : index
    %8 = vector.load %arg4[%c0_4, %c0_5] : memref<8x384xf32, #tpu.memory_space<vmem>>, vector<8x384xf32>
    tpu.vector_store %arg4[%c0_4, %c0_5], %7 {strides = array<i32>} : memref<8x384xf32, #tpu.memory_space<vmem>>, vector<8x384xf32>,
    return
  }
  func.func @transform_0(%arg0: i32, %arg1: i32) -> (i32, i32) {
    %c0_i32 = arith.constant 0 : i32
    return %arg0, %arg1 : i32, i32
  }
  func.func @transform_1(%arg0: i32, %arg1: i32) -> (i32, i32) {
    %c0_i32 = arith.constant 0 : i32
    %c0_i32_0 = arith.constant 0 : i32
    return %c0_i32, %arg1 : i32, i32
  }
  func.func @transform_2(%arg0: i32, %arg1: i32) -> (i32, i32) {
    %c0_i32 = arith.constant 0 : i32
    return %arg0, %arg1 : i32, i32
  }
}

</mosaic_0001>

<bundles_post_ra>
// kernel: tpu_custom_call.1
= control target key start
LH: loop header
LB: loop body
LE: loop exit
PB: predicated region body
PF: predicated region fallthrough
CT: control target
= control target key end

     0   :  { %7 = vsyncpa [#allocation3], 0  ;;  %s735_s0 = inlined_call_operand.hbm [shape: f32[16,384], index: 0, kind: input, shape index: {}]   ;;  %s736_s1 = inlined_call_operand.hbm [shape: f32[1,384], index: 1, kind: input, shape index: {}]   ;;  %s737_s2 = inlined_call_operand.hbm [shape: f32[16,384], index: 2, kind: output, shape index: {}]  }
   0x1   :  { %9 = vsyncpa [#allocation3 + $0x1], 0 }
   0x2   :  { %10 = vsyncpa [#allocation6], 0 }
   0x3   :  { %11 = vsyncpa [#allocation4], 0 }
   0x4   :  { %13 = vsyncpa [#allocation4 + $0x1], 0  ;;  %s592_s9 = smov 0   ;;  %s594_s10 = smov 0  }
   0x5   :  { %s596_s11 = smov 0   ;;  %s598_s12 = smov 0  }
   0x6   :  { %s600_s13 = smov 0   ;;  %s602_s14 = smov 0  }
   0x7 LB: > { %s338_s15 = sadd.s32 4294967295, %s573_s14   ;;  %s339_s16 = sadd.s32 4294967294, %s573_s14   ;;  %s573_s14 = sphi %s602_s14, %s19_s14   ;;  %s569_s13 = sphi %s600_s13, %s749_s13   ;;  %s565_s12 = sphi %s598_s12, %s748_s12   ;;  %s561_s11 = sphi %s596_s11, %s747_s11   ;;  %s557_s10 = sphi %s594_s10, %s746_s10   ;;  %s553_s9 = sphi %s592_s9, %s745_s9  }
   0x8   : > { %p53_p0 = scmp.ne.s32.totalorder %s557_s10, %s553_s9  ;;  %p626_p1 = scmp.eq.s32.totalorder %s338_s15, 0 }
   0x9   : > { %p630_p2 = scmp.eq.s32.totalorder %s338_s15, 1  ;;  %p111_p3 = scmp.eq.s32.totalorder %s339_s16, 1 }
   0xa   : > { %p636_p4 = por %p626_p1, %p53_p0  ;;  %p340_p5 = scmp.ge.s32.totalorder %s573_s14, 1 }
   0xb   : > { %p641_p6 = por %p111_p3, %p53_p0  ;;  %p118_p7 = scmp.lt.s32.totalorder %s573_s14, 3 }
   0xc   : > { %s132_s23 = sshll.u32 %s736_s1, 4  ;;  %s575_s25 = smov [#allocation5]   ;;  %s133_s23 = int_to_ptr.hbm [resolvable:$true] %s132_s23 }
   0xd   : > { %p649_p8 = pnand %p340_p5, %p118_p7  ;;  %s134_s26 = sshll.u32 %s575_s25, 4  ;;  %s135_s26 = int_to_ptr.vmem [resolvable:$true] %s134_s26 }
   0xe   : > { %s31_s27 = sadd.s32 1, %s569_s13  ;;  %s40_s28 = sadd.s32 1, %s561_s11 }
   0xf   : > { %p361_p10 = pneg %p649_p8  ;;  %p33_p12 = scmp.ge.s32.totalorder %s31_s27, 2 }
  0x10   : > { %p47_p13 = scmp.ne.s32.totalorder %s561_s11, %s557_s10  ;;  %p48_p0 = scmp.eq.s32.totalorder %s573_s14, 0 }
  0x11   : > { %p362_p11 = pnand %p361_p10, %p626_p1  ;;  %s751_s27 = smov (%p33_p12, %s31_s27), 0 }
  0x12   : > { %p49_p3 = por %p48_p0, %p47_p13  ;;  %p667_p5 = por %p630_p2, %p47_p13 }
  0x13   : > { %364 = dma.hbm_to_vmem [thread:$0]  (!%p362_p11), %s133_s23, 48, %s135_s26, [#allocation6]  }
  0x14   : > { %s35_s30 = ssub.s32 %s569_s13, %s751_s27  ;;  %p374_p7 = scmp.lt.s32.totalorder %s573_s14, 2 }
  0x15   : > { %p38_p9 = scmp.eq.s32.totalorder %s35_s30, 0  ;;  %s145_s3 = sand.u32 1, %s561_s11  }
  0x16   : > { %s349_s4 = smul.u32 24, %s145_s3  ;;  %p366_p10 = pnand %p374_p7, %p49_p3 }
  0x17   : > { %s676_s5 = scalar_select %p38_p9, %s561_s11, %s40_s28  }
  0x18   : > { %s350_s6 = smul.u32 24, %s569_s13  ;;  %s149_s7 = scalar_lea.vmem [#allocation2], %s349_s4 }
  0x19   : > { %s160_s8 = sshll.u32 %s149_s7, 4  ;;  %s146_s22 = scalar_lea.sflag [#allocation3], %s145_s3  ;;  %s161_s8 = int_to_ptr.vmem [resolvable:$true] %s160_s8 }
  0x1a   : > { %s156_s21 = scalar_lea.hbm %s735_s0, %s350_s6  ;;  %169 = sbr.rel (%p649_p8) target bundleno = 51 (0x33), region = 28 }
  0x1b   : > { %s158_s18 = sshll.u32 %s156_s21, 4  ;;  %s685_s23 = sand.u32 (!%p649_p8), 1, %s557_s10   ;;  %s159_s18 = int_to_ptr.hbm [resolvable:$true] %s158_s18 }
  0x1c   : > { %368 = dma.hbm_to_vmem [thread:$0]  (!%p366_p10), %s159_s18, 384, %s161_s8, %s146_s22  }
  0x1d   : > { %s351_s25 = smul.u32 (!%p649_p8), 24, %s685_s23  ;;  %s172_s26 = scalar_lea.sflag (!%p649_p8), [#allocation3], %s685_s23 }
  0x1f   : > { %s175_s28 = scalar_lea.vmem [#allocation2], %s351_s25 }
  0x20   : > { %540 = dma.done.wait (%p636_p4), %s172_s26, 384  }
  0x21   : > { %542 = vsyncadd (%p636_p4), %s172_s26, 4294966912 }
  0x22   : > { %544 = dma.done.wait (%p626_p1), [#allocation6], 48  }
  0x23   : > { %546 = vsyncadd (%p626_p1), [#allocation6], 4294967248  ;;  %s352_s24 = smul.u32 24, %s565_s12  ;;  %v208_v0 = vld [vmem:[#allocation5] sm:$0x7]  ;;  %v576_v1 = vmov 0  }
  0x24   : > { %vm209_vm0 = vcmp.ne.f32.partialorder %v208_v0, 0.0  ;;  %v205_v3 = vld [vmem:[%s175_s28] sm:$0xff]  ;;  %v206_v5 = vld [vmem:[%s175_s28 + $0x8] sm:$0xff]  ;;  %v207_v7 = vld [vmem:[%s175_s28 + $0x10] sm:$0xff]  ;;  %s201_s19 = scalar_lea.vmem [#allocation7], %s351_s25  ;;  %s224_s12 = scalar_lea.sflag [#allocation4], %s685_s23 }
  0x25   : > { %s237_s4 = scalar_lea.hbm %s737_s2, %s352_s24  ;;  %v210_v2 = vsel %vm209_vm0, 1, %v576_v1  ;;  %s239_s17 = sshll.u32 %s201_s19, 4  ;;  %s240_s17 = int_to_ptr.vmem [resolvable:$true] %s239_s17 }
  0x26   : > { %v211_v4 = vperm.slane %v210_v2, 0  ;;  %v212_v6 = vperm.slane %v210_v2, 1  ;;  %v213_v8 = vperm.slane %v210_v2, 2  ;;  %s241_s6 = sshll.u32 %s237_s4, 4  ;;  %s507_s21 = scalar_lea.hbm %s737_s2, 48  ;;  %s242_s6 = int_to_ptr.hbm [resolvable:$true] %s241_s6 }
  0x27   : > { %s501_s7 = sshra.s32 %s242_s6, 4  ;;  %s502_s7 = int_to_ptr.hbm [resolvable:$true] %s501_s7 }
  0x28   : > { %vm214_vm1 = vcmp.eq.s32.totalorder %v211_v4, 1  ;;  %vm215_vm2 = vcmp.eq.s32.totalorder %v212_v6, 1  ;;  %vm216_vm3 = vcmp.eq.s32.totalorder %v213_v8, 1  ;;  %s503_s8 = scalar_lea.hbm %s502_s7, 24  ;;  %p508_p8 = scmp.lt.s32.totalorder %s502_s7, %s737_s2 }
  0x29   : > { %v217_v9 = vsel %vm214_vm1, 0.0, %v205_v3  ;;  %v218_v10 = vsel %vm215_vm2, 0.0, %v206_v5  ;;  %v219_v11 = vsel %vm216_vm3, 0.0, %v207_v7  ;;  %p504_p1 = scmp.ne.s32.totalorder %s502_s7, %s503_s8  ;;  %p509_p9 = scmp.lt.s32.totalorder %s507_s21, %s503_s8 }
  0x2a   : > { %220 = vst [vmem:[%s201_s19] sm:$0xff] %v217_v9 }
  0x2b   : > { %221 = vst [vmem:[%s201_s19 + $0x8] sm:$0xff] %v218_v10  ;;  %p505_p2 = pnand %p504_p1, %p667_p5  ;;  %p510_p11 = por %p509_p9, %p508_p8 }
  0x2c   : > { %222 = vst [vmem:[%s201_s19 + $0x10] sm:$0xff] %v219_v11 }
  0x2d   : > { %p506_p4 = pneg %p505_p2 }
  0x2f   : > { %p511_p12 = pnand %p510_p11, %p506_p4 }
  0x31   : > { %514 = shalt.err (!%p511_p12)
}
  0x32   : > { %359 = dma.vmem_to_hbm [thread:$0]  (%p667_p5), %s240_s17, 384, %s242_s6, %s224_s12  }
  0x33 PF: > { %s253_s23 = sand.u32 1, %s553_s9   ;;  %p744_p13 = scmp.ge.s32.totalorder %s573_s14, 2 }
  0x34   : > { %s254_s25 = scalar_lea.sflag [#allocation4], %s253_s23 }
  0x35   : > { %p370_p0 = pnand %p744_p13, %p641_p6 }
  0x37   : > { %p371_p3 = pneg %p370_p0 }
  0x39   : > { %548 = dma.done.wait (%p371_p3), %s254_s25, 384  }
  0x3a   : > { %550 = vsyncadd (%p371_p3), %s254_s25, 4294966912  ;;  %s19_s14 = sadd.s32 1, %s573_s14   ;;  %s745_s9 = smov %s557_s10 }
  0x3b   : > { %p16_p7 = scmp.ge.s32.totalorder %s19_s14, 4   ;;  %s746_s10 = smov %s561_s11 }
  0x3c   : > { %s747_s11 = smov %s676_s5  ;;  %s748_s12 = smov %s569_s13 }
  0x3d   : > { %s749_s13 = smov %s751_s27  ;;  %18 = sbr.rel (!%p16_p7) target bundleno = 7 (0x7), region = 78 }
  0x42   :  { %260 = vsyncpa [#allocation3], 1 }
  0x43   :  { %262 = vsyncpa [#allocation3 + $0x1], 1 }
  0x44   :  { %263 = vsyncpa [#allocation6], 1 }
  0x45   :  { %264 = vsyncpa [#allocation4], 1 }
  0x46   :  { %266 = vsyncpa [#allocation4 + $0x1], 1 }

</bundles_post_ra>
